<compile_context>
chip_gen: v6e
topology: v6e:2x2x1
jax: 0.10.0
libtpu: 0.0.40
codegen_flags: <defaults>
</compile_context>

<pallas_src>
import jax
import jax.numpy as jnp
from jax.experimental import pallas as pl
from jax.experimental.pallas import tpu as pltpu

NEG_INF = -1e30


def _round_up(x, m):
    return (x + m - 1) // m * m


def fcnet_kernel(x_ref, w1_ref, b1_ref, w2_ref, b2_ref, mask_ref, o_ref):
    # ---- fc1 (bf16 operands, f32 MXU accumulation) + bias + ReLU ----
    h = jnp.dot(x_ref[...], w1_ref[...], preferred_element_type=jnp.float32)  # [TB, Hp]
    h = jnp.maximum(h + b1_ref[...], 0.0)

    # ---- Dropout(p=0.5): mask holds {0.0, 2.0} (keep / (1-p) folded in) ----
    h = h * mask_ref[...]

    # ---- fc2 ----
    logits = jnp.dot(h.astype(jnp.bfloat16), w2_ref[...],
                     preferred_element_type=jnp.float32)                      # [TB, Op]
    logits = logits + b2_ref[...]   # padded output columns carry -1e30 bias -> masked out

    # ---- LogSoftmax over dim=1 (last axis) ----
    m = jnp.max(logits, axis=1, keepdims=True)
    shifted = logits - m
    lse = jnp.log(jnp.sum(jnp.exp(shifted), axis=1, keepdims=True))
    o_ref[...] = (shifted - lse).astype(o_ref.dtype)


def fcnet_forward(x, w1, b1, w2, b2, dropout_key, *, batch_tile=512):
    """x: [B, I] f32; w1: [H, I], b1: [H], w2: [O, H], b2: [O]  (PyTorch Linear layout)."""
    B, I = x.shape
    H = w1.shape[0]
    O = w2.shape[0]

    Ip = _round_up(I, 128)
    Hp = _round_up(H, 128)
    Op = _round_up(O, 128)
    TB = min(batch_tile, _round_up(B, 16))   # batch tile, multiple of 16 (bf16 sublane packing)
    Bp = _round_up(B, TB)

    # Pad and pre-transpose weights to (in, out); cast MXU operands to bf16.
    x_p = jnp.zeros((Bp, Ip), jnp.float32).at[:B, :I].set(x).astype(jnp.bfloat16)
    w1_p = jnp.zeros((Ip, Hp), jnp.float32).at[:I, :H].set(w1.T).astype(jnp.bfloat16)
    w2_p = jnp.zeros((Hp, Op), jnp.float32).at[:H, :O].set(w2.T).astype(jnp.bfloat16)
    b1_p = jnp.zeros((1, Hp), jnp.float32).at[0, :H].set(b1)
    # Padded output columns get a very negative bias so the log-softmax ignores them.
    b2_p = jnp.full((1, Op), NEG_INF, jnp.float32).at[0, :O].set(b2)

    # Dropout keep-scale mask {0.0, 2.0}, precomputed host-side (no in-kernel PRNG needed).
    # TODO(synk): PyTorch's dropout RNG stream cannot be reproduced bit-exactly; same
    # Bernoulli(0.5) + 1/(1-p) scaling semantics via jax.random.
    keep = jax.random.bernoulli(dropout_key, 0.5, (Bp, Hp))
    mask = keep.astype(jnp.float32) * 2.0

    nb = Bp // TB
    out = pl.pallas_call(
        fcnet_kernel,
        out_shape=jax.ShapeDtypeStruct((Bp, Op), jnp.float32),
        grid=(nb,),
        in_specs=[
            pl.BlockSpec((TB, Ip), lambda i: (i, 0)),   # x tile
            pl.BlockSpec((Ip, Hp), lambda i: (0, 0)),   # w1 (resident)
            pl.BlockSpec((1, Hp), lambda i: (0, 0)),    # b1 (resident)
            pl.BlockSpec((Hp, Op), lambda i: (0, 0)),   # w2 (resident)
            pl.BlockSpec((1, Op), lambda i: (0, 0)),    # b2 (resident)
            pl.BlockSpec((TB, Hp), lambda i: (i, 0)),   # dropout mask tile
        ],
        out_specs=pl.BlockSpec((TB, Op), lambda i: (i, 0)),
        compiler_params=pltpu.CompilerParams(
            dimension_semantics=("parallel",)),
    )(x_p, w1_p, b1_p, w2_p, b2_p, mask)

    return out[:B, :O]


if __name__ == "__main__":
    # Small shapes implied by the module: x [B, input_size]
    B, INPUT, HIDDEN, OUTPUT = 8, 32, 64, 16

    key = jax.random.PRNGKey(0)
    kx, kw1, kb1, kw2, kb2, kdrop = jax.random.split(key, 6)

    x = jax.random.normal(kx, (B, INPUT), dtype=jnp.float32)

    # Deterministic parameter init (PyTorch Linear shapes: weight (out, in), bias (out,))
    bound1 = 1.0 / (INPUT ** 0.5)
    w1 = jax.random.uniform(kw1, (HIDDEN, INPUT), jnp.float32, -bound1, bound1)
    b1 = jax.random.uniform(kb1, (HIDDEN,), jnp.float32, -bound1, bound1)
    bound2 = 1.0 / (HIDDEN ** 0.5)
    w2 = jax.random.uniform(kw2, (OUTPUT, HIDDEN), jnp.float32, -bound2, bound2)
    b2 = jax.random.uniform(kb2, (OUTPUT,), jnp.float32, -bound2, bound2)

    out = fcnet_forward(x, w1, b1, w2, b2, dropout_key=kdrop)
    jax.block_until_ready(out)

    assert out.shape == (B, OUTPUT)
    # rows of log-softmax should exp-sum to ~1
    assert bool(jnp.allclose(jnp.exp(out).sum(axis=1), 1.0, atol=1e-3))

    print("KERNEL_OK")
</pallas_src>

<mosaic_0001>
module attributes {stable_mosaic.version = 11 : i64} {
  func.func @fcnet_kernel(%arg0: i32, %arg1: memref<16x128xbf16, #tpu.memory_space<vmem>>, %arg2: memref<128x128xbf16, #tpu.memory_space<vmem>>, %arg3: memref<1x128xf32, #tpu.memory_space<vmem>>, %arg4: memref<128x128xbf16, #tpu.memory_space<vmem>>, %arg5: memref<1x128xf32, #tpu.memory_space<vmem>>, %arg6: memref<16x128xf32, #tpu.memory_space<vmem>>, %arg7: memref<16x128xf32, #tpu.memory_space<vmem>>) attributes {dimension_semantics = [#tpu.dimension_semantics<parallel>], iteration_bounds = array<i64: 1>, scalar_prefetch = 0 : i64, scratch_operands = 0 : i64, tpu.core_type = #tpu.core_type<tc>, window_params = [{transform_indices = @transform_0, window_bounds = array<i64: 16, 128>}, {pipeline_mode = #tpu.pipeline_mode<synchronous>, transform_indices = @transform_1, window_bounds = array<i64: 128, 128>}, {pipeline_mode = #tpu.pipeline_mode<synchronous>, transform_indices = @transform_2, window_bounds = array<i64: 1, 128>}, {pipeline_mode = #tpu.pipeline_mode<synchronous>, transform_indices = @transform_3, window_bounds = array<i64: 128, 128>}, {pipeline_mode = #tpu.pipeline_mode<synchronous>, transform_indices = @transform_4, window_bounds = array<i64: 1, 128>}, {transform_indices = @transform_5, window_bounds = array<i64: 16, 128>}, {transform_indices = @transform_6, window_bounds = array<i64: 16, 128>}]} {
    %c0 = arith.constant 0 : index
    %c0_0 = arith.constant 0 : index
    %0 = vector.load %arg1[%c0, %c0_0] : memref<16x128xbf16, #tpu.memory_space<vmem>>, vector<16x128xbf16>
    %c0_1 = arith.constant 0 : index
    %c0_2 = arith.constant 0 : index
    %1 = vector.load %arg2[%c0_1, %c0_2] : memref<128x128xbf16, #tpu.memory_space<vmem>>, vector<128x128xbf16>
    %cst = arith.constant dense<0.000000e+00> : vector<16x128xf32>
    %2 = tpu.matmul %0, %1, %cst {dimension_numbers = #tpu.dot_dimension_numbers<[1], [0], [0], [1], [0, 0, 1, 1], [], []>} : vector<16x128xbf16>, vector<128x128xbf16>, vector<16x128xf32> -> vector<16x128xf32>
    %c0_3 = arith.constant 0 : index
    %c0_4 = arith.constant 0 : index
    %3 = vector.load %arg3[%c0_3, %c0_4] : memref<1x128xf32, #tpu.memory_space<vmem>>, vector<1x128xf32>
    %4 = vector.broadcast %3 : vector<1x128xf32> to vector<16x128xf32>
    %5 = arith.addf %2, %4 : vector<16x128xf32>
    %cst_5 = arith.constant 0.000000e+00 : f32
    %6 = vector.broadcast %cst_5 : f32 to vector<16x128xf32>
    %7 = arith.maximumf %5, %6 : vector<16x128xf32>
    %c0_6 = arith.constant 0 : index
    %c0_7 = arith.constant 0 : index
    %8 = vector.load %arg6[%c0_6, %c0_7] : memref<16x128xf32, #tpu.memory_space<vmem>>, vector<16x128xf32>
    %9 = arith.mulf %7, %8 : vector<16x128xf32>
    %10 = arith.truncf %9 : vector<16x128xf32> to vector<16x128xbf16>
    %c0_8 = arith.constant 0 : index
    %c0_9 = arith.constant 0 : index
    %11 = vector.load %arg4[%c0_8, %c0_9] : memref<128x128xbf16, #tpu.memory_space<vmem>>, vector<128x128xbf16>
    %cst_10 = arith.constant dense<0.000000e+00> : vector<16x128xf32>
    %12 = tpu.matmul %10, %11, %cst_10 {dimension_numbers = #tpu.dot_dimension_numbers<[1], [0], [0], [1], [0, 0, 1, 1], [], []>} : vector<16x128xbf16>, vector<128x128xbf16>, vector<16x128xf32> -> vector<16x128xf32>
    %c0_11 = arith.constant 0 : index
    %c0_12 = arith.constant 0 : index
    %13 = vector.load %arg5[%c0_11, %c0_12] : memref<1x128xf32, #tpu.memory_space<vmem>>, vector<1x128xf32>
    %14 = vector.broadcast %13 : vector<1x128xf32> to vector<16x128xf32>
    %15 = arith.addf %12, %14 : vector<16x128xf32>
    %cst_13 = arith.constant dense<0xFF800000> : vector<16xf32>
    %16 = vector.multi_reduction <maximumf>, %15, %cst_13 [1] : vector<16x128xf32> to vector<16xf32>
    %17 = vector.shape_cast %16 : vector<16xf32> to vector<16x1xf32>
    %18 = vector.broadcast %17 : vector<16x1xf32> to vector<16x128xf32>
    %19 = arith.subf %15, %18 : vector<16x128xf32>
    %20 = math.exp %19 : vector<16x128xf32>
    %cst_14 = arith.constant dense<0.000000e+00> : vector<16xf32>
    %21 = vector.multi_reduction <add>, %20, %cst_14 [1] : vector<16x128xf32> to vector<16xf32>
    %22 = vector.shape_cast %21 : vector<16xf32> to vector<16x1xf32>
    %23 = math.log %22 : vector<16x1xf32>
    %24 = vector.broadcast %23 : vector<16x1xf32> to vector<16x128xf32>
    %25 = arith.subf %19, %24 : vector<16x128xf32>
    %c0_15 = arith.constant 0 : index
    %c0_16 = arith.constant 0 : index
    %26 = vector.load %arg7[%c0_15, %c0_16] : memref<16x128xf32, #tpu.memory_space<vmem>>, vector<16x128xf32>
    tpu.vector_store %arg7[%c0_15, %c0_16], %25 {strides = array<i32>} : memref<16x128xf32, #tpu.memory_space<vmem>>, vector<16x128xf32>,
    return
  }
  func.func @transform_0(%arg0: i32) -> (i32, i32) {
    %c0_i32 = arith.constant 0 : i32
    %c0_i32_0 = arith.constant 0 : i32
    return %arg0, %c0_i32 : i32, i32
  }
  func.func @transform_1(%arg0: i32) -> (i32, i32) {
    %c0_i32 = arith.constant 0 : i32
    %c0_i32_0 = arith.constant 0 : i32
    %c0_i32_1 = arith.constant 0 : i32
    return %c0_i32, %c0_i32_0 : i32, i32
  }
  func.func @transform_2(%arg0: i32) -> (i32, i32) {
    %c0_i32 = arith.constant 0 : i32
    %c0_i32_0 = arith.constant 0 : i32
    %c0_i32_1 = arith.constant 0 : i32
    return %c0_i32, %c0_i32_0 : i32, i32
  }
  func.func @transform_3(%arg0: i32) -> (i32, i32) {
    %c0_i32 = arith.constant 0 : i32
    %c0_i32_0 = arith.constant 0 : i32
    %c0_i32_1 = arith.constant 0 : i32
    return %c0_i32, %c0_i32_0 : i32, i32
  }
  func.func @transform_4(%arg0: i32) -> (i32, i32) {
    %c0_i32 = arith.constant 0 : i32
    %c0_i32_0 = arith.constant 0 : i32
    %c0_i32_1 = arith.constant 0 : i32
    return %c0_i32, %c0_i32_0 : i32, i32
  }
  func.func @transform_5(%arg0: i32) -> (i32, i32) {
    %c0_i32 = arith.constant 0 : i32
    %c0_i32_0 = arith.constant 0 : i32
    return %arg0, %c0_i32 : i32, i32
  }
  func.func @transform_6(%arg0: i32) -> (i32, i32) {
    %c0_i32 = arith.constant 0 : i32
    %c0_i32_0 = arith.constant 0 : i32
    return %arg0, %c0_i32 : i32, i32
  }
}

</mosaic_0001>

<bundles_post_ra>
// kernel: tpu_custom_call.1
= control target key start
LH: loop header
LB: loop body
LE: loop exit
PB: predicated region body
PF: predicated region fallthrough
CT: control target
= control target key end

     0   :  { %11 = vsyncpa [#allocation3], 0  ;;  %s654_s0 = inlined_call_operand.hbm [shape: bf16[16,128], index: 0, kind: input, shape index: {}]   ;;  %s655_s1 = inlined_call_operand.hbm [shape: bf16[128,128], index: 1, kind: input, shape index: {}]   ;;  %s656_s2 = inlined_call_operand.vmem [shape: f32[1,128], index: 2, kind: input, shape index: {}]   ;;  %s657_s3 = inlined_call_operand.hbm [shape: bf16[128,128], index: 3, kind: input, shape index: {}]   ;;  %s658_s4 = inlined_call_operand.vmem [shape: f32[1,128], index: 4, kind: input, shape index: {}]   ;;  %s659_s5 = inlined_call_operand.hbm [shape: f32[16,128], index: 5, kind: input, shape index: {}]   ;;  %s660_s6 = inlined_call_operand.hbm [shape: f32[16,128], index: 6, kind: output, shape index: {}]  }
   0x1   :  { %12 = vsyncpa [#allocation6], 0 }
   0x2   :  { %13 = vsyncpa [#allocation9], 0 }
   0x3   :  { %14 = vsyncpa [#allocation4], 0  ;;  %s581_s21 = smov [#allocation5]   ;;  %s582_s23 = smov [#allocation2]  }
   0x4   :  { %s32_s22 = sshll.u32 %s581_s21, 4  ;;  %s20_s24 = sshll.u32 %s582_s23, 4  ;;  %s33_s22 = int_to_ptr.vmem [resolvable:$true] %s32_s22  ;;  %s21_s24 = int_to_ptr.vmem [resolvable:$true] %s20_s24 }
   0x5   :  { %s481_s25 = scalar_lea.vmem %s33_s22, 1024  ;;  %p486_p1 = scmp.lt.s32.totalorder %s33_s22, %s33_s22 }
   0x6   :  { %p482_p0 = scmp.ne.s32.totalorder %s33_s22, %s481_s25  ;;  %p487_p2 = scmp.lt.s32.totalorder %s481_s25, %s481_s25 }
   0x8   :  { %p488_p3 = por %p487_p2, %p486_p1 }
   0xa   :  { %p489_p4 = pnand %p488_p3, %p482_p0 }
   0xc   :  { %492 = shalt.err (!%p489_p4)
}
   0xd   :  { %s583_s26 = smov 64   ;;  %s584_s27 = smov 4  }
   0xe   :  { %38 = dma.hbm_to_vmem [thread:$0]  %s655_s1, 1024, %s33_s22, [#allocation6], %s583_s26, %s583_s26, %s584_s27  }
   0xf   :  { %s501_s30 = scalar_lea.vmem %s21_s24, 128  ;;  %p506_p6 = scmp.lt.s32.totalorder %s21_s24, %s21_s24 }
  0x10   :  { %p502_p5 = scmp.ne.s32.totalorder %s21_s24, %s501_s30  ;;  %p507_p7 = scmp.lt.s32.totalorder %s501_s30, %s501_s30 }
  0x12   :  { %p508_p8 = por %p507_p7, %p506_p6 }
  0x14   :  { %p509_p9 = pnand %p508_p8, %p502_p5 }
  0x16   :  { %512 = shalt.err (!%p509_p9)
}
  0x17   :  { %26 = dma.hbm_to_vmem [thread:$0]  %s654_s0, 128, %s21_s24, [#allocation3], %s583_s26, %s583_s26, %s584_s27  }
  0x18   :  { %s585_s9 = smov [#allocation7]   ;;  %s586_s11 = smov [#allocation8]  }
  0x19   :  { %s46_s10 = sshll.u32 %s585_s9, 4  ;;  %s60_s12 = sshll.u32 %s586_s11, 4  ;;  %s47_s10 = int_to_ptr.vmem [resolvable:$true] %s46_s10  ;;  %s61_s12 = int_to_ptr.vmem [resolvable:$true] %s60_s12 }
  0x1a   :  { %s521_s13 = scalar_lea.vmem %s47_s10, 1024  ;;  %p526_p11 = scmp.lt.s32.totalorder %s47_s10, %s47_s10 }
  0x1b   :  { %p522_p10 = scmp.ne.s32.totalorder %s47_s10, %s521_s13  ;;  %p527_p12 = scmp.lt.s32.totalorder %s521_s13, %s521_s13 }
  0x1d   :  { %p528_p13 = por %p527_p12, %p526_p11 }
  0x1f   :  { %p529_p0 = pnand %p528_p13, %p522_p10 }
  0x21   :  { %532 = shalt.err (!%p529_p0)
}
  0x22   :  { %52 = dma.hbm_to_vmem [thread:$0]  %s657_s3, 1024, %s47_s10, [#allocation6], %s583_s26, %s583_s26, %s584_s27  }
  0x23   :  { %s541_s15 = scalar_lea.vmem %s61_s12, 256  ;;  %p546_p2 = scmp.lt.s32.totalorder %s61_s12, %s61_s12 }
  0x24   :  { %p542_p1 = scmp.ne.s32.totalorder %s61_s12, %s541_s15  ;;  %p547_p3 = scmp.lt.s32.totalorder %s541_s15, %s541_s15 }
  0x26   :  { %p548_p4 = por %p547_p3, %p546_p2 }
  0x28   :  { %p549_p5 = pnand %p548_p4, %p542_p1 }
  0x2a   :  { %552 = shalt.err (!%p549_p5)
}
  0x2b   :  { %s587_s0 = smov 128   ;;  %s588_s16 = smov 8  }
  0x2c   :  { %66 = dma.hbm_to_vmem [thread:$0]  %s659_s5, 256, %s61_s12, [#allocation9], %s587_s0, %s587_s0, %s588_s16  }
  0x2d   :  { %573 = dma.done.wait [#allocation3], 128  }
  0x2e   :  { %574 = vsyncadd [#allocation3], 4294967168 }
  0x2f   :  { %575 = dma.done.wait [#allocation6], 2048  }
  0x30   :  { %576 = vsyncadd [#allocation6], 4294965248 }
  0x31   :  { %577 = dma.done.wait [#allocation9], 256  }
  0x32   :  { %578 = vsyncadd [#allocation9], 4294967040  ;;  %v589_v0 = vmov 0.0   ;;  %vm590_vm0 = vmmov 0   ;;  %v448_v1 = vld [vmem:[#allocation5 + $0x38] sm:$0xff]   ;;  %v449_v2 = vld [vmem:[#allocation5 + $0x30] sm:$0xff]  }
  0x33   :  { %397 = vmatprep.subr.bf16.mxu0 %v589_v0  ;;  %413 = vmatprep.mubr.msk.bf16.mxu0 %vm590_vm0, %v589_v0  ;;  %v450_v3 = vld [vmem:[#allocation5 + $0x28] sm:$0xff]   ;;  %v457_v4 = vld [vmem:[#allocation7 + $0x38] sm:$0xff]   ;;  %v451_v5 = vld [vmem:[#allocation5 + $0x20] sm:$0xff]  }
  0x34   :  { %417 = vmatprep.subr.bf16.mxu1 %v589_v0  ;;  %433 = vmatprep.mubr.msk.bf16.mxu1 %vm590_vm0, %v589_v0  ;;  %v458_v6 = vld [vmem:[#allocation7 + $0x30] sm:$0xff]   ;;  %v452_v7 = vld [vmem:[#allocation5 + $0x18] sm:$0xff]   ;;  %v459_v8 = vld [vmem:[#allocation7 + $0x28] sm:$0xff]  }
  0x35   :  { %398 = vmatpush3.bf16.msra.mxu0 %v448_v1  ;;  %418 = vmatpush3.bf16.msra.mxu1 %v457_v4  ;;  %v453_v9 = vld [vmem:[#allocation5 + $0x10] sm:$0xff]   ;;  %v460_v10 = vld [vmem:[#allocation7 + $0x20] sm:$0xff]   ;;  %v454_v11 = vld [vmem:[#allocation5 + $0x8] sm:$0xff]  }
  0x36   :  { %399 = vmatprep.subr.bf16.mxu0 %v589_v0  ;;  %419 = vmatprep.subr.bf16.mxu1 %v589_v0  ;;  %v461_v12 = vld [vmem:[#allocation7 + $0x18] sm:$0xff]   ;;  %v455_v13 = vld [vmem:[#allocation5] sm:$0xff]   ;;  %v462_v15 = vld [vmem:[#allocation7 + $0x10] sm:$0xff]  }
  0x37   :  { %v456_v14 = vld [vmem:[#allocation2] sm:$0xff]   ;;  %v463_v16 = vld [vmem:[#allocation7 + $0x8] sm:$0xff]   ;;  %v464_v17 = vld [vmem:[#allocation7] sm:$0xff]  }
  0x38   :  { %v360_v18 = vld [vmem:[%s656_s2] ss:$0 sm:$0xff]  ;;  %v202_v25 = vld [vmem:[#allocation8] sm:$0xff]  ;;  %v203_v26 = vld [vmem:[#allocation8 + $0x8] sm:$0xff]  ;;  %s591_s2 = smov [#allocation10]  }
  0x39   :  { %400 = vmatpush3.bf16.msra.mxu0 %v449_v2  ;;  %420 = vmatpush3.bf16.msra.mxu1 %v458_v6  ;;  %v370_v32 = vld [vmem:[%s658_s4] ss:$0 sm:$0xff]  ;;  %s346_s4 = sshll.u32 %s591_s2, 4  ;;  %s347_s4 = int_to_ptr.vmem [resolvable:$true] %s346_s4 }
  0x3a   :  { %401 = vmatprep.subr.bf16.mxu0 %v589_v0  ;;  %421 = vmatprep.subr.bf16.mxu1 %v589_v0  ;;  %s553_s21 = scalar_lea.vmem %s347_s4, 256  ;;  %p558_p7 = scmp.lt.s32.totalorder %s347_s4, %s347_s4 }
  0x3b   :  { %p554_p6 = scmp.ne.s32.totalorder %s347_s4, %s553_s21  ;;  %p559_p8 = scmp.lt.s32.totalorder %s553_s21, %s553_s21 }
  0x3d   :  { %402 = vmatpush3.bf16.msra.mxu0 %v450_v3  ;;  %422 = vmatpush3.bf16.msra.mxu1 %v459_v8  ;;  %p560_p9 = por %p559_p8, %p558_p7 }
  0x3e   :  { %403 = vmatprep.subr.bf16.mxu0 %v589_v0  ;;  %423 = vmatprep.subr.bf16.mxu1 %v589_v0 }
  0x3f   :  { %p561_p10 = pnand %p560_p9, %p554_p6 }
  0x41   :  { %404 = vmatpush3.bf16.msra.mxu0 %v451_v5  ;;  %424 = vmatpush3.bf16.msra.mxu1 %v460_v10 }
  0x42   :  { %405 = vmatprep.subr.bf16.mxu0 %v589_v0  ;;  %425 = vmatprep.subr.bf16.mxu1 %v589_v0 }
  0x45   :  { %406 = vmatpush3.bf16.msra.mxu0 %v452_v7  ;;  %426 = vmatpush3.bf16.msra.mxu1 %v461_v12 }
  0x46   :  { %407 = vmatprep.subr.bf16.mxu0 %v589_v0  ;;  %427 = vmatprep.subr.bf16.mxu1 %v589_v0 }
  0x49   :  { %408 = vmatpush3.bf16.msra.mxu0 %v453_v9  ;;  %428 = vmatpush3.bf16.msra.mxu1 %v462_v15 }
  0x4a   :  { %409 = vmatprep.subr.bf16.mxu0 %v589_v0  ;;  %429 = vmatprep.subr.bf16.mxu1 %v589_v0 }
  0x4d   :  { %410 = vmatpush3.bf16.msra.mxu0 %v454_v11  ;;  %430 = vmatpush3.bf16.msra.mxu1 %v463_v16 }
  0x4e   :  { %411 = vmatprep.subr.bf16.mxu0 %v589_v0  ;;  %431 = vmatprep.subr.bf16.mxu1 %v589_v0 }
  0x51   :  { %412 = vmatpush3.bf16.msra.mxu0 %v455_v13  ;;  %432 = vmatpush3.bf16.msra.mxu1 %v464_v17 }
  0x54   :  { %414 = vmatmul.mubr.bf16.vlgmr.msra.gmra.mxu0 %v456_v14 }
 0x114   :  { %v193_v19 = vpop.f32.mrf.mxu0 }
 0x115   :  { %v194_v20 = vadd.f32 %v360_v18, %v193_v19 }
 0x116   :  { %v415_v21 = vpop.f32.mrf.mxu0 }
 0x117   :  { %v200_v23 = vmax.f32 %v194_v20, 0.0 }
 0x118   :  { %v196_v22 = vpop.f32.mrf.mxu0 }
 0x119   :  { %v197_v24 = vadd.f32 %v360_v18, %v196_v22  ;;  %v204_v29 = vmul.f32 %v202_v25, %v200_v23 }
 0x11a   :  { %v416_v27 = vpop.f32.mrf.mxu0 }
 0x11b   :  { %v201_v28 = vmax.f32 %v197_v24, 0.0 }
 0x11d   :  { %v205_v30 = vmul.f32 %v203_v26, %v201_v28 }
 0x11f   :  { %v206_v31 = vpack.c.bf16 %v205_v30, %v204_v29 }
 0x121   :  { %434 = vmatmul.mubr.bf16.vlgmr.msra.gmra.mxu1 %v206_v31 }
 0x1e1   :  { %v312_v33 = vpop.f32.mrf.mxu1 }
 0x1e2   :  { %v313_v34 = vadd.f32 %v370_v32, %v312_v33 }
 0x1e3   :  { %v435_v35 = vpop.f32.mrf.mxu1 }
 0x1e4   :  { %319 = vmax.xlane.f32.xlu0 %v313_v34 }
 0x1e5   :  { %v315_v36 = vpop.f32.mrf.mxu1 }
 0x1e6   :  { %v316_v37 = vadd.f32 %v370_v32, %v315_v36 }
 0x1e7   :  { %v436_v38 = vpop.f32.mrf.mxu1 }
 0x1e8   :  { %321 = vmax.xlane.f32.xlu0 %v316_v37 }
 0x26d   :  { %v320_v39 = vpop.xlane.xlu0 %319 }
 0x26e   :  { %v323_v40 = vsub.f32 %v313_v34, %v320_v39 }
 0x270   :  { %v325_v41 = vmul.f32 1.442695, %v323_v40 }
 0x271   :  { %v322_v42 = vpop.xlane.xlu0 %321 }
 0x272   :  { %v324_v43 = vsub.f32 %v316_v37, %v322_v42  ;;  %465 = vpow2.f32 %v325_v41 }
 0x274   :  { %v327_v44 = vmul.f32 1.442695, %v324_v43 }
 0x276   :  { %467 = vpow2.f32 %v327_v44 }
 0x27f   :  { %v466_v45 = vpop.eup %465 }
 0x280   :  { %329 = vadd.xlane.f32.xlu1 %v466_v45 }
 0x283   :  { %v468_v46 = vpop.eup %467 }
 0x284   :  { %331 = vadd.xlane.f32.xlu1 %v468_v46 }
 0x309   :  { %v330_v47 = vpop.xlane.xlu1 %329 }
 0x30a   :  { %469 = vlog2.f32 %v330_v47 }
 0x30d   :  { %v332_v48 = vpop.xlane.xlu1 %331 }
 0x30e   :  { %471 = vlog2.f32 %v332_v48 }
 0x317   :  { %v470_v49 = vpop.eup %469 }
 0x318   :  { %v334_v50 = vmul.f32 0.6931472, %v470_v49 }
 0x31a   :  { %v337_v51 = vsub.f32 %v323_v40, %v334_v50 }
 0x31b   :  { %v472_v52 = vpop.eup %471 }
 0x31c   :  { %v336_v53 = vmul.f32 0.6931472, %v472_v52  ;;  %339 = vst [vmem:[#allocation10] sm:$0xff] %v337_v51 }
 0x31e   :  { %v338_v54 = vsub.f32 %v324_v43, %v336_v53 }
 0x320   :  { %340 = vst [vmem:[#allocation10 + $0x8] sm:$0xff] %v338_v54 }
 0x321   :  { %564 = shalt.err (!%p561_p10)
}
 0x322   :  { %352 = dma.vmem_to_hbm [thread:$0]  %s347_s4, 256, %s660_s6, [#allocation4], %s587_s0, %s587_s0, %s588_s16  }
 0x323   :  { %579 = dma.done.wait [#allocation4], 256  }
 0x324   :  { %580 = vsyncadd [#allocation4], 4294967040 }
 0x325   :  { %356 = vsyncpa [#allocation3], 1 }
 0x326   :  { %357 = vsyncpa [#allocation6], 1 }
 0x327   :  { %358 = vsyncpa [#allocation9], 1 }
 0x328   :  { %359 = vsyncpa [#allocation4], 1 }

</bundles_post_ra>
